<compile_context>
chip_gen: v7x
topology: tpu7x:2x2x1
jax: 0.10.0
libtpu: 0.0.40
codegen_flags: <defaults>
</compile_context>

<pallas_src>
import functools

import numpy as np
import jax
import jax.numpy as jnp
from jax import lax
from jax.experimental import pallas as pl
from jax.experimental.pallas import tpu as pltpu


# ----------------------------- Pallas kernel ------------------------------ #

def sgf2_kernel(x_ref, w_ref, b_ref, out_ref, *, seq_len, bz, bz_pad, n_in, H):
    """Merged (lane-concatenated) GRU recurrence + fused gated reconstruction.

    x_ref : (seq_len*bz_pad, n_in)      time-major, batch zero-padded to bz_pad rows/step
    w_ref : (n_in + H + 2, 3H)          rows = [ W_ih | W_hh | b_ih | b_hh_n(+pad) ]
                                        (block-diagonal across the two GRUs, gate columns
                                         grouped as [r_v r_s z_v z_s n_v n_s], b_hh_{r,z}
                                         folded into b_ih)
    b_ref : (H, N)                      rows [0:Hv]=(1-tanh(w))*Bv^T, [Hv:H]=tanh(w)*Bs^T
    out   : (bz, N)
    """
    H2, H3 = 2 * H, 3 * H

    # ---- static row slices of the single packed weight operand -----------------------
    w_all = w_ref[...]
    W_ih = w_all[0:n_in, :]                           # (n+d, 3H)
    W_hh = w_all[n_in:n_in + H, :]                    # (H,   3H)
    b_ih = w_all[n_in + H:n_in + H + 1, :]            # (1, 3H)   b_hh r/z already folded in
    bhh_n = w_all[n_in + H + 1:n_in + H + 2, 0:H]     # (1, H)

    # ---- hoisted input projection: ONE matmul for all timesteps ----------------------
    p = (jnp.dot(x_ref[...], W_ih, preferred_element_type=jnp.float32)
         + b_ih)                                      # (seq*bzp, 3H)

    bhh_n_b = jnp.broadcast_to(bhh_n, (bz_pad, H))    # hoisted broadcast (not per-step)

    def step(h, pt):
        # single fused hidden matmul per step; 1 sigmoid + 1 tanh EUP push per step
        gh = jnp.dot(h, W_hh, preferred_element_type=jnp.float32)        # (bzp, 3H)
        rz = jax.nn.sigmoid(pt[:, 0:H2] + gh[:, 0:H2])                   # [r_v r_s z_v z_s]
        r = rz[:, 0:H]
        z = rz[:, H:H2]
        c = jnp.tanh(pt[:, H2:H3] + r * (gh[:, H2:H3] + bhh_n_b))        # [n_v n_s]
        return (1.0 - z) * c + z * h

    h = jnp.zeros((bz_pad, H), jnp.float32)

    if seq_len <= 32:
        # full static unroll; aligned 8-row sublane-group slices of the hoisted projection
        for t in range(seq_len):
            h = step(h, p[t * bz_pad:(t + 1) * bz_pad, :])
    else:
        # TODO(synk): long sequences — rolled loop bounds live ranges (no vreg spill cliff).
        def body(t, hc):
            start = pl.multiple_of(t * bz_pad, bz_pad)
            pt = lax.dynamic_slice(p, (start, 0), (bz_pad, H3))
            return step(hc, pt)
        h = lax.fori_loop(0, seq_len, body, h, unroll=4)

    # ---- fused epilogue: tanh(w) gating pre-folded into b_ref -> single matmul --------
    out_ref[...] = jnp.dot(h, b_ref[...], preferred_element_type=jnp.float32)[0:bz, :]


def spectral_graph_forecast2(inp, w_pack, b_comb, n, *, bz_pad=8):
    """Wrapper: one transpose to time-major, pad batch to a full sublane group, call kernel."""
    bz, seq_len, feat = inp.shape
    H, N = b_comb.shape
    bzp = max(bz_pad, bz)

    # single transpose of the whole input (no x / x_hat split — the block-diagonal W_ih
    # routes the n|d column regions to the right gates inside the kernel)
    x_tm = jnp.transpose(inp, (1, 0, 2)).astype(jnp.float32)        # (seq, bz, n+d)
    x_tm = jnp.pad(x_tm, ((0, 0), (0, bzp - bz), (0, 0)))           # batch -> 8 rows/step
    x_cat = x_tm.reshape(seq_len * bzp, feat)

    kernel = functools.partial(sgf2_kernel, seq_len=seq_len, bz=bz, bz_pad=bzp,
                               n_in=feat, H=H)

    # Gridless: every operand is a single full VMEM block (total footprint is a few KiB).
    # TODO(synk): if bz / seq_len / N scale up, add a leading "parallel" batch grid axis
    # (megacore on v7x) and stream the sequence; re-derive tiling against 64 MiB VMEM.
    return pl.pallas_call(
        kernel,
        out_shape=jax.ShapeDtypeStruct((bz, N), jnp.float32),
        in_specs=[pl.BlockSpec(memory_space=pltpu.MemorySpace.VMEM)] * 3,
        out_specs=pl.BlockSpec(memory_space=pltpu.MemorySpace.VMEM),
    )(x_cat, w_pack, b_comb)


# ------------------------- parameter construction ------------------------- #

def init_gru_params(key, in_dim, hidden):
    """PyTorch nn.GRU default init: uniform(-1/sqrt(H), 1/sqrt(H)); gate order r|z|n."""
    k = 1.0 / np.sqrt(hidden)
    k0, k1, k2, k3 = jax.random.split(key, 4)
    w_ih = jax.random.uniform(k0, (3 * hidden, in_dim), minval=-k, maxval=k, dtype=jnp.float32)
    w_hh = jax.random.uniform(k1, (3 * hidden, hidden), minval=-k, maxval=k, dtype=jnp.float32)
    b_ih = jax.random.uniform(k2, (3 * hidden,), minval=-k, maxval=k, dtype=jnp.float32)
    b_hh = jax.random.uniform(k3, (3 * hidden,), minval=-k, maxval=k, dtype=jnp.float32)
    return w_ih, w_hh, b_ih, b_hh


def build_packed_params(rnn_v, rnn_s, Bv, Bs, w_param, n, d):
    """Merge the two GRUs into block-diagonal gate-grouped weights and pack everything.

    Returns:
      W_pack : (n+d+H+2, 3H)  rows = [W_ih | W_hh | b_ih (b_hh r/z folded) | b_hh_n + pad]
      B_comb : (H, N)         rows = [(1-tanh(w))*Bv^T ; tanh(w)*Bs^T]
    Gate column layout (lane axis): [r_v r_s z_v z_s n_v n_s]; hidden layout: [h_v | h_s].
    """
    wih_v, whh_v, bih_v, bhh_v = [np.asarray(a, np.float32) for a in rnn_v]
    wih_s, whh_s, bih_s, bhh_s = [np.asarray(a, np.float32) for a in rnn_s]
    Hv, Hs = n, d
    H = Hv + Hs

    def gate(w, g, Hg):           # gate g (0=r, 1=z, 2=n) of a PyTorch-stacked tensor
        return w[g * Hg:(g + 1) * Hg]

    W_ih = np.zeros((n + d, 3 * H), np.float32)
    W_hh = np.zeros((H, 3 * H), np.float32)
    b_ih = np.zeros((3 * H,), np.float32)
    bhh_n = np.zeros((H,), np.float32)

    col_v = [0, H, 2 * H]                  # starts of r_v, z_v, n_v
    col_s = [Hv, H + Hv, 2 * H + Hv]       # starts of r_s, z_s, n_s

    for g in range(3):
        W_ih[0:n, col_v[g]:col_v[g] + Hv] = gate(wih_v, g, Hv).T
        W_ih[n:n + d, col_s[g]:col_s[g] + Hs] = gate(wih_s, g, Hs).T
        W_hh[0:Hv, col_v[g]:col_v[g] + Hv] = gate(whh_v, g, Hv).T
        W_hh[Hv:H, col_s[g]:col_s[g] + Hs] = gate(whh_s, g, Hs).T
        b_ih[col_v[g]:col_v[g] + Hv] = gate(bih_v, g, Hv)
        b_ih[col_s[g]:col_s[g] + Hs] = gate(bih_s, g, Hs)

    # fold b_hh_r / b_hh_z into b_ih (exact — they are added outside the r-multiply)
    for g in range(2):
        b_ih[col_v[g]:col_v[g] + Hv] += gate(bhh_v, g, Hv)
        b_ih[col_s[g]:col_s[g] + Hs] += gate(bhh_s, g, Hs)
    # b_hh_n stays separate: c = tanh(i_n + b_ih_n + r * (h @ W_hn + b_hh_n))
    bhh_n[0:Hv] = gate(bhh_v, 2, Hv)
    bhh_n[Hv:H] = gate(bhh_s, 2, Hs)

    # epilogue: fold tanh(w) gating into the stacked reconstruction -> one matmul
    g_w = np.tanh(np.asarray(w_param, np.float32))                     # (N,)
    N = g_w.shape[0]
    B_comb = np.zeros((H, N), np.float32)
    B_comb[0:Hv, :] = (1.0 - g_w)[None, :] * np.asarray(Bv, np.float32).T
    B_comb[Hv:H, :] = g_w[None, :] * np.asarray(Bs, np.float32).T

    W_pack = np.zeros((n + d + H + 2, 3 * H), np.float32)
    W_pack[0:n + d] = W_ih
    W_pack[n + d:n + d + H] = W_hh
    W_pack[n + d + H] = b_ih
    W_pack[n + d + H + 1, 0:H] = bhh_n

    return jnp.asarray(W_pack), jnp.asarray(B_comb)


# ---------------------------- pure-JAX reference --------------------------- #

def gru_ref(xseq, w_ih, w_hh, b_ih, b_hh):
    H = w_hh.shape[1]

    def step(h, xt):
        gi = xt @ w_ih.T + b_ih
        gh = h @ w_hh.T + b_hh
        i_r, i_z, i_n = jnp.split(gi, 3, axis=-1)
        h_r, h_z, h_n = jnp.split(gh, 3, axis=-1)
        r = jax.nn.sigmoid(i_r + h_r)
        z = jax.nn.sigmoid(i_z + h_z)
        c = jnp.tanh(i_n + r * h_n)
        return (1.0 - z) * c + z * h, None

    h0 = jnp.zeros((xseq.shape[0], H), jnp.float32)
    hT, _ = lax.scan(step, h0, jnp.swapaxes(xseq, 0, 1))
    return hT


def forward_ref(inp, raw, n):
    x, x_hat = inp[:, :, :n], inp[:, :, n:]
    h_s = gru_ref(x_hat, *raw["srnn"])
    h_v = gru_ref(x, *raw["rnn"])
    xtilde = h_s @ raw["Bs"].T
    x1 = h_v @ raw["Bv"].T
    g = jnp.tanh(raw["w"])
    return g * xtilde + (1.0 - g) * x1


# ----------------------------------- main ---------------------------------- #

if __name__ == "__main__":
    # Small shapes consistent with the module: N graph nodes, n sampled nodes,
    # d frequency components, input last-dim = n + d.
    N, n_samp, d, seq_len, bz = 16, 8, 8, 8, 2

    # Deterministic graph: ring-graph Laplacian eigenvectors.
    A = np.zeros((N, N), dtype=np.float64)
    for i in range(N):
        A[i, (i + 1) % N] = 1.0
        A[(i + 1) % N, i] = 1.0
    L = np.diag(A.sum(1)) - A
    _, V = np.linalg.eigh(L)                       # (N, N) eigenvector matrix
    sample = np.arange(n_samp)                     # in-sample node indices
    freqs = np.arange(d)                           # low frequencies
    Vf = V[:, freqs]                               # (N, d)
    Bs = Vf                                        # spectral-domain reconstruction (N, d)
    Bv = Vf @ np.linalg.pinv(Vf[sample, :])        # vertex-domain reconstruction   (N, n)

    key = jax.random.PRNGKey(0)
    k_srnn, k_rnn, k_inp = jax.random.split(key, 3)

    srnn_params = init_gru_params(k_srnn, d, d)          # spectral GRU
    rnn_params = init_gru_params(k_rnn, n_samp, n_samp)  # vertex GRU
    w_param = jnp.full((N,), 0.01, dtype=jnp.float32)    # self.w.data.fill_(0.01)

    # Host-side packing: merged block-diagonal gate-grouped GRU weights + fused epilogue.
    # TODO(synk): tanh(w) is folded into B_comb, so w is off the differentiable path —
    # inference only; a training variant needs a custom VJP for w.
    W_pack, B_comb = build_packed_params(rnn_params, srnn_params, Bv, Bs, w_param,
                                         n_samp, d)

    inp = jax.random.normal(k_inp, (bz, seq_len, n_samp + d), dtype=jnp.float32)

    out = spectral_graph_forecast2(inp, W_pack, B_comb, n_samp)
    out = jax.block_until_ready(out)

    raw = {
        "srnn": srnn_params,
        "rnn": rnn_params,
        "Bs": jnp.asarray(Bs, dtype=jnp.float32),
        "Bv": jnp.asarray(Bv, dtype=jnp.float32),
        "w": w_param,
    }
    ref = jax.block_until_ready(forward_ref(inp, raw, n_samp))

    assert out.shape == (bz, N), f"bad output shape {out.shape}"
    np.testing.assert_allclose(np.asarray(out), np.asarray(ref), rtol=2e-3, atol=2e-3)

    print("KERNEL_OK")
</pallas_src>

<mosaic_0001>
module attributes {stable_mosaic.version = 11 : i64} {
  func.func @sgf2_kernel(%arg0: memref<64x16xf32, #tpu.memory_space<vmem>>, %arg1: memref<34x48xf32, #tpu.memory_space<vmem>>, %arg2: memref<16x16xf32, #tpu.memory_space<vmem>>, %arg3: memref<2x16xf32, #tpu.memory_space<vmem>>) attributes {dimension_semantics = [], scalar_prefetch = 0 : i64, scratch_operands = 0 : i64, tpu.core_type = #tpu.core_type<tc>} {
    %c0 = arith.constant 0 : index
    %c0_0 = arith.constant 0 : index
    %0 = vector.load %arg1[%c0, %c0_0] : memref<34x48xf32, #tpu.memory_space<vmem>>, vector<34x48xf32>
    %1 = vector.extract_strided_slice %0 {offsets = [0, 0], sizes = [16, 48], strides = [1, 1]} : vector<34x48xf32> to vector<16x48xf32>
    %2 = vector.extract_strided_slice %0 {offsets = [16, 0], sizes = [16, 48], strides = [1, 1]} : vector<34x48xf32> to vector<16x48xf32>
    %3 = vector.extract_strided_slice %0 {offsets = [32, 0], sizes = [1, 48], strides = [1, 1]} : vector<34x48xf32> to vector<1x48xf32>
    %4 = vector.extract_strided_slice %0 {offsets = [33, 0], sizes = [1, 16], strides = [1, 1]} : vector<34x48xf32> to vector<1x16xf32>
    %c0_1 = arith.constant 0 : index
    %c0_2 = arith.constant 0 : index
    %5 = vector.load %arg0[%c0_1, %c0_2] : memref<64x16xf32, #tpu.memory_space<vmem>>, vector<64x16xf32>
    %cst = arith.constant dense<0.000000e+00> : vector<64x48xf32>
    %6 = tpu.matmul %5, %1, %cst {dimension_numbers = #tpu.dot_dimension_numbers<[1], [0], [0], [1], [0, 0, 1, 1], [], []>} : vector<64x16xf32>, vector<16x48xf32>, vector<64x48xf32> -> vector<64x48xf32>
    %7 = vector.broadcast %3 : vector<1x48xf32> to vector<64x48xf32>
    %8 = arith.addf %6, %7 : vector<64x48xf32>
    %9 = vector.shape_cast %4 : vector<1x16xf32> to vector<1x16xf32>
    %10 = vector.broadcast %9 : vector<1x16xf32> to vector<8x16xf32>
    %cst_3 = arith.constant 0.000000e+00 : f32
    %11 = vector.broadcast %cst_3 : f32 to vector<8x16xf32>
    %12 = vector.extract_strided_slice %8 {offsets = [0, 0], sizes = [8, 48], strides = [1, 1]} : vector<64x48xf32> to vector<8x48xf32>
    %cst_4 = arith.constant dense<0.000000e+00> : vector<8x48xf32>
    %13 = tpu.matmul %11, %2, %cst_4 {dimension_numbers = #tpu.dot_dimension_numbers<[1], [0], [0], [1], [0, 0, 1, 1], [], []>} : vector<8x16xf32>, vector<16x48xf32>, vector<8x48xf32> -> vector<8x48xf32>
    %14 = vector.extract_strided_slice %12 {offsets = [0, 0], sizes = [8, 32], strides = [1, 1]} : vector<8x48xf32> to vector<8x32xf32>
    %15 = vector.extract_strided_slice %13 {offsets = [0, 0], sizes = [8, 32], strides = [1, 1]} : vector<8x48xf32> to vector<8x32xf32>
    %16 = arith.addf %14, %15 : vector<8x32xf32>
    %17 = arith.negf %16 : vector<8x32xf32>
    %18 = math.exp %17 : vector<8x32xf32>
    %cst_5 = arith.constant 1.000000e+00 : f32
    %19 = vector.broadcast %cst_5 : f32 to vector<8x32xf32>
    %20 = arith.addf %19, %18 : vector<8x32xf32>
    %21 = arith.divf %19, %20 : vector<8x32xf32>
    %22 = vector.extract_strided_slice %21 {offsets = [0, 0], sizes = [8, 16], strides = [1, 1]} : vector<8x32xf32> to vector<8x16xf32>
    %23 = vector.extract_strided_slice %21 {offsets = [0, 16], sizes = [8, 16], strides = [1, 1]} : vector<8x32xf32> to vector<8x16xf32>
    %24 = vector.extract_strided_slice %12 {offsets = [0, 32], sizes = [8, 16], strides = [1, 1]} : vector<8x48xf32> to vector<8x16xf32>
    %25 = vector.extract_strided_slice %13 {offsets = [0, 32], sizes = [8, 16], strides = [1, 1]} : vector<8x48xf32> to vector<8x16xf32>
    %26 = arith.addf %25, %10 : vector<8x16xf32>
    %27 = arith.mulf %22, %26 : vector<8x16xf32>
    %28 = arith.addf %24, %27 : vector<8x16xf32>
    %29 = math.tanh %28 : vector<8x16xf32>
    %cst_6 = arith.constant 1.000000e+00 : f32
    %30 = vector.broadcast %cst_6 : f32 to vector<8x16xf32>
    %31 = arith.subf %30, %23 : vector<8x16xf32>
    %32 = arith.mulf %31, %29 : vector<8x16xf32>
    %33 = arith.mulf %23, %11 : vector<8x16xf32>
    %34 = arith.addf %32, %33 : vector<8x16xf32>
    %35 = vector.extract_strided_slice %8 {offsets = [8, 0], sizes = [8, 48], strides = [1, 1]} : vector<64x48xf32> to vector<8x48xf32>
    %cst_7 = arith.constant dense<0.000000e+00> : vector<8x48xf32>
    %36 = tpu.matmul %34, %2, %cst_7 {dimension_numbers = #tpu.dot_dimension_numbers<[1], [0], [0], [1], [0, 0, 1, 1], [], []>} : vector<8x16xf32>, vector<16x48xf32>, vector<8x48xf32> -> vector<8x48xf32>
    %37 = vector.extract_strided_slice %35 {offsets = [0, 0], sizes = [8, 32], strides = [1, 1]} : vector<8x48xf32> to vector<8x32xf32>
    %38 = vector.extract_strided_slice %36 {offsets = [0, 0], sizes = [8, 32], strides = [1, 1]} : vector<8x48xf32> to vector<8x32xf32>
    %39 = arith.addf %37, %38 : vector<8x32xf32>
    %40 = arith.negf %39 : vector<8x32xf32>
    %41 = math.exp %40 : vector<8x32xf32>
    %cst_8 = arith.constant 1.000000e+00 : f32
    %42 = vector.broadcast %cst_8 : f32 to vector<8x32xf32>
    %43 = arith.addf %42, %41 : vector<8x32xf32>
    %44 = arith.divf %42, %43 : vector<8x32xf32>
    %45 = vector.extract_strided_slice %44 {offsets = [0, 0], sizes = [8, 16], strides = [1, 1]} : vector<8x32xf32> to vector<8x16xf32>
    %46 = vector.extract_strided_slice %44 {offsets = [0, 16], sizes = [8, 16], strides = [1, 1]} : vector<8x32xf32> to vector<8x16xf32>
    %47 = vector.extract_strided_slice %35 {offsets = [0, 32], sizes = [8, 16], strides = [1, 1]} : vector<8x48xf32> to vector<8x16xf32>
    %48 = vector.extract_strided_slice %36 {offsets = [0, 32], sizes = [8, 16], strides = [1, 1]} : vector<8x48xf32> to vector<8x16xf32>
    %49 = arith.addf %48, %10 : vector<8x16xf32>
    %50 = arith.mulf %45, %49 : vector<8x16xf32>
    %51 = arith.addf %47, %50 : vector<8x16xf32>
    %52 = math.tanh %51 : vector<8x16xf32>
    %cst_9 = arith.constant 1.000000e+00 : f32
    %53 = vector.broadcast %cst_9 : f32 to vector<8x16xf32>
    %54 = arith.subf %53, %46 : vector<8x16xf32>
    %55 = arith.mulf %54, %52 : vector<8x16xf32>
    %56 = arith.mulf %46, %34 : vector<8x16xf32>
    %57 = arith.addf %55, %56 : vector<8x16xf32>
    %58 = vector.extract_strided_slice %8 {offsets = [16, 0], sizes = [8, 48], strides = [1, 1]} : vector<64x48xf32> to vector<8x48xf32>
    %cst_10 = arith.constant dense<0.000000e+00> : vector<8x48xf32>
    %59 = tpu.matmul %57, %2, %cst_10 {dimension_numbers = #tpu.dot_dimension_numbers<[1], [0], [0], [1], [0, 0, 1, 1], [], []>} : vector<8x16xf32>, vector<16x48xf32>, vector<8x48xf32> -> vector<8x48xf32>
    %60 = vector.extract_strided_slice %58 {offsets = [0, 0], sizes = [8, 32], strides = [1, 1]} : vector<8x48xf32> to vector<8x32xf32>
    %61 = vector.extract_strided_slice %59 {offsets = [0, 0], sizes = [8, 32], strides = [1, 1]} : vector<8x48xf32> to vector<8x32xf32>
    %62 = arith.addf %60, %61 : vector<8x32xf32>
    %63 = arith.negf %62 : vector<8x32xf32>
    %64 = math.exp %63 : vector<8x32xf32>
    %cst_11 = arith.constant 1.000000e+00 : f32
    %65 = vector.broadcast %cst_11 : f32 to vector<8x32xf32>
    %66 = arith.addf %65, %64 : vector<8x32xf32>
    %67 = arith.divf %65, %66 : vector<8x32xf32>
    %68 = vector.extract_strided_slice %67 {offsets = [0, 0], sizes = [8, 16], strides = [1, 1]} : vector<8x32xf32> to vector<8x16xf32>
    %69 = vector.extract_strided_slice %67 {offsets = [0, 16], sizes = [8, 16], strides = [1, 1]} : vector<8x32xf32> to vector<8x16xf32>
    %70 = vector.extract_strided_slice %58 {offsets = [0, 32], sizes = [8, 16], strides = [1, 1]} : vector<8x48xf32> to vector<8x16xf32>
    %71 = vector.extract_strided_slice %59 {offsets = [0, 32], sizes = [8, 16], strides = [1, 1]} : vector<8x48xf32> to vector<8x16xf32>
    %72 = arith.addf %71, %10 : vector<8x16xf32>
    %73 = arith.mulf %68, %72 : vector<8x16xf32>
    %74 = arith.addf %70, %73 : vector<8x16xf32>
    %75 = math.tanh %74 : vector<8x16xf32>
    %cst_12 = arith.constant 1.000000e+00 : f32
    %76 = vector.broadcast %cst_12 : f32 to vector<8x16xf32>
    %77 = arith.subf %76, %69 : vector<8x16xf32>
    %78 = arith.mulf %77, %75 : vector<8x16xf32>
    %79 = arith.mulf %69, %57 : vector<8x16xf32>
    %80 = arith.addf %78, %79 : vector<8x16xf32>
    %81 = vector.extract_strided_slice %8 {offsets = [24, 0], sizes = [8, 48], strides = [1, 1]} : vector<64x48xf32> to vector<8x48xf32>
    %cst_13 = arith.constant dense<0.000000e+00> : vector<8x48xf32>
    %82 = tpu.matmul %80, %2, %cst_13 {dimension_numbers = #tpu.dot_dimension_numbers<[1], [0], [0], [1], [0, 0, 1, 1], [], []>} : vector<8x16xf32>, vector<16x48xf32>, vector<8x48xf32> -> vector<8x48xf32>
    %83 = vector.extract_strided_slice %81 {offsets = [0, 0], sizes = [8, 32], strides = [1, 1]} : vector<8x48xf32> to vector<8x32xf32>
    %84 = vector.extract_strided_slice %82 {offsets = [0, 0], sizes = [8, 32], strides = [1, 1]} : vector<8x48xf32> to vector<8x32xf32>
    %85 = arith.addf %83, %84 : vector<8x32xf32>
    %86 = arith.negf %85 : vector<8x32xf32>
    %87 = math.exp %86 : vector<8x32xf32>
    %cst_14 = arith.constant 1.000000e+00 : f32
    %88 = vector.broadcast %cst_14 : f32 to vector<8x32xf32>
    %89 = arith.addf %88, %87 : vector<8x32xf32>
    %90 = arith.divf %88, %89 : vector<8x32xf32>
    %91 = vector.extract_strided_slice %90 {offsets = [0, 0], sizes = [8, 16], strides = [1, 1]} : vector<8x32xf32> to vector<8x16xf32>
    %92 = vector.extract_strided_slice %90 {offsets = [0, 16], sizes = [8, 16], strides = [1, 1]} : vector<8x32xf32> to vector<8x16xf32>
    %93 = vector.extract_strided_slice %81 {offsets = [0, 32], sizes = [8, 16], strides = [1, 1]} : vector<8x48xf32> to vector<8x16xf32>
    %94 = vector.extract_strided_slice %82 {offsets = [0, 32], sizes = [8, 16], strides = [1, 1]} : vector<8x48xf32> to vector<8x16xf32>
    %95 = arith.addf %94, %10 : vector<8x16xf32>
    %96 = arith.mulf %91, %95 : vector<8x16xf32>
    %97 = arith.addf %93, %96 : vector<8x16xf32>
    %98 = math.tanh %97 : vector<8x16xf32>
    %cst_15 = arith.constant 1.000000e+00 : f32
    %99 = vector.broadcast %cst_15 : f32 to vector<8x16xf32>
    %100 = arith.subf %99, %92 : vector<8x16xf32>
    %101 = arith.mulf %100, %98 : vector<8x16xf32>
    %102 = arith.mulf %92, %80 : vector<8x16xf32>
    %103 = arith.addf %101, %102 : vector<8x16xf32>
    %104 = vector.extract_strided_slice %8 {offsets = [32, 0], sizes = [8, 48], strides = [1, 1]} : vector<64x48xf32> to vector<8x48xf32>
    %cst_16 = arith.constant dense<0.000000e+00> : vector<8x48xf32>
    %105 = tpu.matmul %103, %2, %cst_16 {dimension_numbers = #tpu.dot_dimension_numbers<[1], [0], [0], [1], [0, 0, 1, 1], [], []>} : vector<8x16xf32>, vector<16x48xf32>, vector<8x48xf32> -> vector<8x48xf32>
    %106 = vector.extract_strided_slice %104 {offsets = [0, 0], sizes = [8, 32], strides = [1, 1]} : vector<8x48xf32> to vector<8x32xf32>
    %107 = vector.extract_strided_slice %105 {offsets = [0, 0], sizes = [8, 32], strides = [1, 1]} : vector<8x48xf32> to vector<8x32xf32>
    %108 = arith.addf %106, %107 : vector<8x32xf32>
    %109 = arith.negf %108 : vector<8x32xf32>
    %110 = math.exp %109 : vector<8x32xf32>
    %cst_17 = arith.constant 1.000000e+00 : f32
    %111 = vector.broadcast %cst_17 : f32 to vector<8x32xf32>
    %112 = arith.addf %111, %110 : vector<8x32xf32>
    %113 = arith.divf %111, %112 : vector<8x32xf32>
    %114 = vector.extract_strided_slice %113 {offsets = [0, 0], sizes = [8, 16], strides = [1, 1]} : vector<8x32xf32> to vector<8x16xf32>
    %115 = vector.extract_strided_slice %113 {offsets = [0, 16], sizes = [8, 16], strides = [1, 1]} : vector<8x32xf32> to vector<8x16xf32>
    %116 = vector.extract_strided_slice %104 {offsets = [0, 32], sizes = [8, 16], strides = [1, 1]} : vector<8x48xf32> to vector<8x16xf32>
    %117 = vector.extract_strided_slice %105 {offsets = [0, 32], sizes = [8, 16], strides = [1, 1]} : vector<8x48xf32> to vector<8x16xf32>
    %118 = arith.addf %117, %10 : vector<8x16xf32>
    %119 = arith.mulf %114, %118 : vector<8x16xf32>
    %120 = arith.addf %116, %119 : vector<8x16xf32>
    %121 = math.tanh %120 : vector<8x16xf32>
    %cst_18 = arith.constant 1.000000e+00 : f32
    %122 = vector.broadcast %cst_18 : f32 to vector<8x16xf32>
    %123 = arith.subf %122, %115 : vector<8x16xf32>
    %124 = arith.mulf %123, %121 : vector<8x16xf32>
    %125 = arith.mulf %115, %103 : vector<8x16xf32>
    %126 = arith.addf %124, %125 : vector<8x16xf32>
    %127 = vector.extract_strided_slice %8 {offsets = [40, 0], sizes = [8, 48], strides = [1, 1]} : vector<64x48xf32> to vector<8x48xf32>
    %cst_19 = arith.constant dense<0.000000e+00> : vector<8x48xf32>
    %128 = tpu.matmul %126, %2, %cst_19 {dimension_numbers = #tpu.dot_dimension_numbers<[1], [0], [0], [1], [0, 0, 1, 1], [], []>} : vector<8x16xf32>, vector<16x48xf32>, vector<8x48xf32> -> vector<8x48xf32>
    %129 = vector.extract_strided_slice %127 {offsets = [0, 0], sizes = [8, 32], strides = [1, 1]} : vector<8x48xf32> to vector<8x32xf32>
    %130 = vector.extract_strided_slice %128 {offsets = [0, 0], sizes = [8, 32], strides = [1, 1]} : vector<8x48xf32> to vector<8x32xf32>
    %131 = arith.addf %129, %130 : vector<8x32xf32>
    %132 = arith.negf %131 : vector<8x32xf32>
    %133 = math.exp %132 : vector<8x32xf32>
    %cst_20 = arith.constant 1.000000e+00 : f32
    %134 = vector.broadcast %cst_20 : f32 to vector<8x32xf32>
    %135 = arith.addf %134, %133 : vector<8x32xf32>
    %136 = arith.divf %134, %135 : vector<8x32xf32>
    %137 = vector.extract_strided_slice %136 {offsets = [0, 0], sizes = [8, 16], strides = [1, 1]} : vector<8x32xf32> to vector<8x16xf32>
    %138 = vector.extract_strided_slice %136 {offsets = [0, 16], sizes = [8, 16], strides = [1, 1]} : vector<8x32xf32> to vector<8x16xf32>
    %139 = vector.extract_strided_slice %127 {offsets = [0, 32], sizes = [8, 16], strides = [1, 1]} : vector<8x48xf32> to vector<8x16xf32>
    %140 = vector.extract_strided_slice %128 {offsets = [0, 32], sizes = [8, 16], strides = [1, 1]} : vector<8x48xf32> to vector<8x16xf32>
    %141 = arith.addf %140, %10 : vector<8x16xf32>
    %142 = arith.mulf %137, %141 : vector<8x16xf32>
    %143 = arith.addf %139, %142 : vector<8x16xf32>
    %144 = math.tanh %143 : vector<8x16xf32>
    %cst_21 = arith.constant 1.000000e+00 : f32
    %145 = vector.broadcast %cst_21 : f32 to vector<8x16xf32>
    %146 = arith.subf %145, %138 : vector<8x16xf32>
    %147 = arith.mulf %146, %144 : vector<8x16xf32>
    %148 = arith.mulf %138, %126 : vector<8x16xf32>
    %149 = arith.addf %147, %148 : vector<8x16xf32>
    %150 = vector.extract_strided_slice %8 {offsets = [48, 0], sizes = [8, 48], strides = [1, 1]} : vector<64x48xf32> to vector<8x48xf32>
    %cst_22 = arith.constant dense<0.000000e+00> : vector<8x48xf32>
    %151 = tpu.matmul %149, %2, %cst_22 {dimension_numbers = #tpu.dot_dimension_numbers<[1], [0], [0], [1], [0, 0, 1, 1], [], []>} : vector<8x16xf32>, vector<16x48xf32>, vector<8x48xf32> -> vector<8x48xf32>
    %152 = vector.extract_strided_slice %150 {offsets = [0, 0], sizes = [8, 32], strides = [1, 1]} : vector<8x48xf32> to vector<8x32xf32>
    %153 = vector.extract_strided_slice %151 {offsets = [0, 0], sizes = [8, 32], strides = [1, 1]} : vector<8x48xf32> to vector<8x32xf32>
    %154 = arith.addf %152, %153 : vector<8x32xf32>
    %155 = arith.negf %154 : vector<8x32xf32>
    %156 = math.exp %155 : vector<8x32xf32>
    %cst_23 = arith.constant 1.000000e+00 : f32
    %157 = vector.broadcast %cst_23 : f32 to vector<8x32xf32>
    %158 = arith.addf %157, %156 : vector<8x32xf32>
    %159 = arith.divf %157, %158 : vector<8x32xf32>
    %160 = vector.extract_strided_slice %159 {offsets = [0, 0], sizes = [8, 16], strides = [1, 1]} : vector<8x32xf32> to vector<8x16xf32>
    %161 = vector.extract_strided_slice %159 {offsets = [0, 16], sizes = [8, 16], strides = [1, 1]} : vector<8x32xf32> to vector<8x16xf32>
    %162 = vector.extract_strided_slice %150 {offsets = [0, 32], sizes = [8, 16], strides = [1, 1]} : vector<8x48xf32> to vector<8x16xf32>
    %163 = vector.extract_strided_slice %151 {offsets = [0, 32], sizes = [8, 16], strides = [1, 1]} : vector<8x48xf32> to vector<8x16xf32>
    %164 = arith.addf %163, %10 : vector<8x16xf32>
    %165 = arith.mulf %160, %164 : vector<8x16xf32>
    %166 = arith.addf %162, %165 : vector<8x16xf32>
    %167 = math.tanh %166 : vector<8x16xf32>
    %cst_24 = arith.constant 1.000000e+00 : f32
    %168 = vector.broadcast %cst_24 : f32 to vector<8x16xf32>
    %169 = arith.subf %168, %161 : vector<8x16xf32>
    %170 = arith.mulf %169, %167 : vector<8x16xf32>
    %171 = arith.mulf %161, %149 : vector<8x16xf32>
    %172 = arith.addf %170, %171 : vector<8x16xf32>
    %173 = vector.extract_strided_slice %8 {offsets = [56, 0], sizes = [8, 48], strides = [1, 1]} : vector<64x48xf32> to vector<8x48xf32>
    %cst_25 = arith.constant dense<0.000000e+00> : vector<8x48xf32>
    %174 = tpu.matmul %172, %2, %cst_25 {dimension_numbers = #tpu.dot_dimension_numbers<[1], [0], [0], [1], [0, 0, 1, 1], [], []>} : vector<8x16xf32>, vector<16x48xf32>, vector<8x48xf32> -> vector<8x48xf32>
    %175 = vector.extract_strided_slice %173 {offsets = [0, 0], sizes = [8, 32], strides = [1, 1]} : vector<8x48xf32> to vector<8x32xf32>
    %176 = vector.extract_strided_slice %174 {offsets = [0, 0], sizes = [8, 32], strides = [1, 1]} : vector<8x48xf32> to vector<8x32xf32>
    %177 = arith.addf %175, %176 : vector<8x32xf32>
    %178 = arith.negf %177 : vector<8x32xf32>
    %179 = math.exp %178 : vector<8x32xf32>
    %cst_26 = arith.constant 1.000000e+00 : f32
    %180 = vector.broadcast %cst_26 : f32 to vector<8x32xf32>
    %181 = arith.addf %180, %179 : vector<8x32xf32>
    %182 = arith.divf %180, %181 : vector<8x32xf32>
    %183 = vector.extract_strided_slice %182 {offsets = [0, 0], sizes = [8, 16], strides = [1, 1]} : vector<8x32xf32> to vector<8x16xf32>
    %184 = vector.extract_strided_slice %182 {offsets = [0, 16], sizes = [8, 16], strides = [1, 1]} : vector<8x32xf32> to vector<8x16xf32>
    %185 = vector.extract_strided_slice %173 {offsets = [0, 32], sizes = [8, 16], strides = [1, 1]} : vector<8x48xf32> to vector<8x16xf32>
    %186 = vector.extract_strided_slice %174 {offsets = [0, 32], sizes = [8, 16], strides = [1, 1]} : vector<8x48xf32> to vector<8x16xf32>
    %187 = arith.addf %186, %10 : vector<8x16xf32>
    %188 = arith.mulf %183, %187 : vector<8x16xf32>
    %189 = arith.addf %185, %188 : vector<8x16xf32>
    %190 = math.tanh %189 : vector<8x16xf32>
    %cst_27 = arith.constant 1.000000e+00 : f32
    %191 = vector.broadcast %cst_27 : f32 to vector<8x16xf32>
    %192 = arith.subf %191, %184 : vector<8x16xf32>
    %193 = arith.mulf %192, %190 : vector<8x16xf32>
    %194 = arith.mulf %184, %172 : vector<8x16xf32>
    %195 = arith.addf %193, %194 : vector<8x16xf32>
    %c0_28 = arith.constant 0 : index
    %c0_29 = arith.constant 0 : index
    %196 = vector.load %arg2[%c0_28, %c0_29] : memref<16x16xf32, #tpu.memory_space<vmem>>, vector<16x16xf32>
    %cst_30 = arith.constant dense<0.000000e+00> : vector<8x16xf32>
    %197 = tpu.matmul %195, %196, %cst_30 {dimension_numbers = #tpu.dot_dimension_numbers<[1], [0], [0], [1], [0, 0, 1, 1], [], []>} : vector<8x16xf32>, vector<16x16xf32>, vector<8x16xf32> -> vector<8x16xf32>
    %198 = vector.extract_strided_slice %197 {offsets = [0, 0], sizes = [2, 16], strides = [1, 1]} : vector<8x16xf32> to vector<2x16xf32>
    %c0_31 = arith.constant 0 : index
    %c0_32 = arith.constant 0 : index
    %199 = vector.load %arg3[%c0_31, %c0_32] : memref<2x16xf32, #tpu.memory_space<vmem>>, vector<2x16xf32>
    tpu.vector_store %arg3[%c0_31, %c0_32], %198 {strides = array<i32>} : memref<2x16xf32, #tpu.memory_space<vmem>>, vector<2x16xf32>,
    return
  }
}

</mosaic_0001>

<bundles_post_ra>
// kernel: tpu_custom_call.1
= control target key start
LH: loop header
LB: loop body
LE: loop exit
PB: predicated region body
PF: predicated region fallthrough
CT: control target
= control target key end

     0   :  { %v28_v3 = vlaneseq  ;;  %v1327_v4 = vmov 0.0|0.0   ;;  %vm1328_vm0 = vmmov 0   ;;  %v1329_v7 = vmov 0.0   ;;  %s1524_s0 = inlined_call_operand.vmem [shape: f32[64,16], index: 0, kind: input, shape index: {}]   ;;  %s1525_s1 = inlined_call_operand.vmem [shape: f32[34,48], index: 1, kind: input, shape index: {}]   ;;  %s1526_s2 = inlined_call_operand.vmem [shape: f32[16,16], index: 2, kind: input, shape index: {}]   ;;  %s1527_s3 = inlined_call_operand.hbm [shape: f32[2,16], index: 3, kind: output, shape index: {}]  }
   0x1   :  { %v15_v0 = vld [vmem:[%s1525_s1] sm:$0xff]  ;;  %v16_v1 = vld [vmem:[%s1525_s1 + $0x8] sm:$0xff]  ;;  %v17_v2 = vld [vmem:[%s1525_s1 + $0x10] sm:$0xff]  ;;  %1221 = vmatprep.subr.bf16.mxu1 %v1327_v4  ;;  %1158 = vmatprep.mubr.msk.f32.mxu1 %vm1328_vm0, %v1329_v7  ;;  %vm32_vm1 = vcmask 130048  }
   0x2   :  { %v1217_v5 = vpack.c.bf16 %v16_v1, %v15_v0  ;;  %v18_v6 = vld [vmem:[%s1525_s1 + $0x18] sm:$0xff]  ;;  %v20_v8 = vld [vmem:[%s1524_s0] sm:$0xff]  ;;  %v29_v10 = vshrl.u32 %v28_v3, 7 }
   0x3   :  { %v1372_v9 = vpack.c.bf16 %v18_v6, %v17_v2  ;;  %1142 = vmatprep.mubr.msk.f32.mxu0 %vm32_vm1, %v20_v8 }
   0x4   :  { %8 = vsyncpa [#allocation3], 0  ;;  %1218 = vmatprep.subr.bf16.mxu0 %v1217_v5  ;;  %v19_v11 = vld [vmem:[%s1525_s1 + $0x20] sm:$0x3]  ;;  %v21_v12 = vld [vmem:[%s1524_s0 + $0x8] sm:$0xff]  ;;  %v30_v13 = vsub.s32 0, %v29_v10 }
   0x5   :  { %1223 = vmatpush3.bf16.msra.mxu1 %v1372_v9  ;;  %1220 = vmatpush3.bf16.msra.mxu0 %v1217_v5  ;;  %v164_v14 = vsub.s32 1, %v29_v10  ;;  %s1330_s1 = smov 32   ;;  %s1331_s26 = smov 96   ;;  %v22_v53 = vld [vmem:[%s1524_s0 + $0x10] sm:$0xff]  ;;  %v23_v54 = vld [vmem:[%s1524_s0 + $0x18] sm:$0xff]  ;;  %vm1061_vm2 = vcmask 123904  }
   0x6   :  { %1224 = vmatprep.subr.bf16.mxu1 %v1327_v4  ;;  %1233 = vmatprep.subr.bf16.mxu0 %v1327_v4  ;;  %v1384_v16 = vrot.slane %v19_v11, %v30_v13  ;;  %s1332_s27 = smov 112   ;;  %s1333_s16 = smov [#allocation2]  }
   0x7   :  { %v165_v15 = vrot.slane %v19_v11, %v164_v14  ;;  %s1069_s17 = sshll.u32 %s1333_s16, 4  ;;  %s1070_s17 = int_to_ptr.vmem [resolvable:$true] %s1069_s17 }
   0x8   :  { %1159 = vmatmul.mubr.f32.vlgmr.msra.gmra.mrb[0].mxu1 %v1329_v7  ;;  %1143 = vmatmul.mubr.msk.f32.vlgmr.msra.gmra.mrb[0].mxu0 %vm32_vm1, %v21_v12  ;;  %p1308_p1 = scmp.lt.s32.totalorder %s1070_s17, %s1070_s17 }
   0x9   :  { %247 = vrot.lane.b32.xlu0 %v165_v15, %s1330_s1  ;;  %1226 = vmatpush3.bf16.msra.mxu1 %v1372_v9 }
   0xa   :  { %1165 = vmatprep.mubr.msk.f32.mxu1 %vm1328_vm0, %v1329_v7  ;;  %1227 = vmatprep.subr.bf16.mxu1 %v1327_v4 }
   0xb   :  { %1235 = vmatpush3.bf16.msra.mxu0 %v1372_v9  ;;  %1145 = vmatprep.mubr.msk.f32.mxu0 %vm32_vm1, %v22_v53 }
   0xc   :  { %1239 = vmatprep.subr.bf16.mxu0 %v1327_v4  ;;  %1146 = vmatmul.mubr.msk.f32.gmra.mrb[2].mxu0 %vm32_vm1, %v23_v54 }
  0x7b   :  { %v1395_v17 = vpop.permute.xlu0 %247 }
  0xdb   :  { %v235_v18 = vpop.f32.mrb[0].mxu1  ;;  %v1144_v19 = vpop.f32.mrb[0].mxu0 }
  0xdc   :  { %v250_v20 = vadd.f32 %v1395_v17, %v235_v18  ;;  %v1160_v21 = vpop.f32.mrb[1].mxu1  ;;  %v123_v22 = vpop.f32.mrb[1].mxu0  ;;  %v129_v43 = vadd.f32 %v1144_v19, %v1384_v16 }
  0xdd   :  { %v124_v23 = vadd.f32 %v123_v22, %v1384_v16 }
  0xde   :  { %252 = vrot.lane.b32.xlu0 %v250_v20, %s1331_s26 }
  0xdf   :  { %v239_v24 = vadd.f32 %v235_v18, %v124_v23  ;;  %v1147_v61 = vpop.f32.mrb[2].mxu0 }
  0xe0   :  { %v133_v62 = vpop.f32.mrb[3].mxu0 }
  0xe1   :  { %v1085_v25 = vmul.f32 -1.442695, %v239_v24  ;;  %v134_v3 = vadd.f32 %v133_v62, %v1384_v16 }
  0xe3   :  { %1255 = vpow2.f32 %v1085_v25 }
  0xed   :  { %v1256_v26 = vpop.eup %1255 }
  0xee   :  { %v243_v27 = vadd.f32 1.0, %v1256_v26 }
  0xf0   :  { %1257 = vrcp.f32 %v243_v27 }
  0xfa   :  { %v1258_v28 = vpop.eup %1257 }
  0xfb   :  { %v262_v34 = vsub.f32 1.0, %v1258_v28  ;;  %v268_v36 = vmul.f32 0.0, %v1258_v28 }
 0x150   :  { %v253_v29 = vpop.permute.xlu0 %252 }
 0x151   :  { %v255_v30 = vmul.f32 %v1258_v28, %v253_v29  ;;  %v139_v28 = vadd.f32 %v1147_v61, %v1384_v16 }
 0x153   :  { %257 = vrot.lane.b32.xlu1 %v255_v30, %s1330_s1 }
 0x1c5   :  { %v258_v31 = vpop.permute.xlu1 %257 }
 0x1c6   :  { %v260_v32 = vadd.f32 %v258_v31, %v124_v23 }
 0x1c8   :  { %1259 = vtanh.f32 %v260_v32 }
 0x1d2   :  { %v1260_v33 = vpop.eup %1259 }
 0x1d3   :  { %264 = vrot.lane.b32.xlu1 %v1260_v33, %s1332_s27 }
 0x245   :  { %v265_v35 = vpop.permute.xlu1 %264 }
 0x246   :  { %v267_v37 = vmul.f32 %v265_v35, %v262_v34 }
 0x248   :  { %v269_v38 = vadd.f32 %v268_v36, %v267_v37 }
 0x24a   :  { %271 = vrot.lane.b32.xlu0 %v269_v38, %s1332_s27 }
 0x2bc   :  { %v272_v39 = vpop.permute.xlu0 %271 }
 0x2bd   :  { %1166 = vmatmul.mubr.msk.f32.vlgmr.msra.gmra.mrb[2].mxu1 %vm32_vm1, %v272_v39  ;;  %v25_v39 = vld [vmem:[%s1524_s0 + $0x28] sm:$0xff] }
 0x2be   :  { %1229 = vmatpush3.bf16.msra.mxu1 %v1372_v9  ;;  %1172 = vmatprep.mubr.msk.f32.mxu1 %vm1328_vm0, %v1329_v7 }
 0x2bf   :  { %1230 = vmatprep.subr.bf16.mxu1 %v1327_v4 }
 0x390   :  { %v341_v40 = vpop.f32.mrb[2].mxu1 }
 0x391   :  { %v352_v41 = vadd.f32 %v341_v40, %v1395_v17  ;;  %v1167_v42 = vpop.f32.mrb[3].mxu1  ;;  %v345_v44 = vadd.f32 %v341_v40, %v129_v43  ;;  %v26_v40 = vld [vmem:[%s1524_s0 + $0x30] sm:$0xff] }
 0x393   :  { %354 = vrot.lane.b32.xlu1 %v352_v41, %s1331_s26  ;;  %v1087_v45 = vmul.f32 -1.442695, %v345_v44  ;;  %v27_v41 = vld [vmem:[%s1524_s0 + $0x38] sm:$0xff] }
 0x395   :  { %1261 = vpow2.f32 %v1087_v45 }
 0x39f   :  { %v1262_v46 = vpop.eup %1261 }
 0x3a0   :  { %v349_v47 = vadd.f32 1.0, %v1262_v46 }
 0x3a2   :  { %1263 = vrcp.f32 %v349_v47 }
 0x3ac   :  { %v1264_v48 = vpop.eup %1263 }
 0x3ad   :  { %v364_v56 = vsub.f32 1.0, %v1264_v48  ;;  %v370_v58 = vmul.f32 %v1264_v48, %v269_v38  ;;  %v24_v38 = vld [vmem:[%s1524_s0 + $0x20] sm:$0xff] }
 0x3ae   :  { %1148 = vmatprep.mubr.msk.f32.mxu0 %vm32_vm1, %v24_v38 }
 0x3af   :  { %1149 = vmatmul.mubr.msk.f32.gmra.mrb[4].mxu0 %vm32_vm1, %v25_v39 }
 0x3b0   :  { %1151 = vmatprep.mubr.msk.f32.mxu0 %vm32_vm1, %v26_v40 }
 0x3b3   :  { %1152 = vmatmul.mubr.msk.f32.gmra.mrb[6].mxu0 %vm32_vm1, %v27_v41 }
 0x3b4   :  { %1186 = vmatprep.mubr.msk.f32.mxu0 %vm1328_vm0, %v1329_v7 }
 0x405   :  { %v355_v49 = vpop.permute.xlu1 %354 }
 0x406   :  { %v357_v50 = vmul.f32 %v1264_v48, %v355_v49 }
 0x408   :  { %359 = vrot.lane.b32.xlu0 %v357_v50, %s1330_s1 }
 0x47a   :  { %v360_v51 = vpop.permute.xlu0 %359 }
 0x47b   :  { %v362_v52 = vadd.f32 %v360_v51, %v129_v43 }
 0x47d   :  { %1265 = vtanh.f32 %v362_v52 }
 0x482   :  { %v1150_v48 = vpop.f32.mrb[4].mxu0 }
 0x483   :  { %v143_v49 = vpop.f32.mrb[5].mxu0 }
 0x486   :  { %v1462_v50 = vpop.f32.mrb[6].mxu0 }
 0x487   :  { %v1266_v55 = vpop.eup %1265  ;;  %v1464_v51 = vpop.f32.mrb[7].mxu0 }
 0x488   :  { %366 = vrot.lane.b32.xlu1 %v1266_v55, %s1332_s27 }
 0x4fa   :  { %v367_v57 = vpop.permute.xlu1 %366 }
 0x4fb   :  { %v369_v59 = vmul.f32 %v367_v57, %v364_v56  ;;  %v144_v56 = vadd.f32 %v143_v49, %v1384_v16 }
 0x4fd   :  { %v371_v60 = vadd.f32 %v370_v58, %v369_v59 }
 0x4ff   :  { %373 = vrot.lane.b32.xlu0 %v371_v60, %s1332_s27 }
 0x571   :  { %v374_v63 = vpop.permute.xlu0 %373 }
 0x572   :  { %1173 = vmatmul.mubr.msk.f32.vlgmr.msra.gmra.mrb[4].mxu1 %vm32_vm1, %v374_v63 }
 0x573   :  { %1232 = vmatpush3.bf16.msra.mxu1 %v1372_v9  ;;  %1179 = vmatprep.mubr.msk.f32.mxu1 %vm1328_vm0, %v1329_v7 }
 0x574   :  { %1236 = vmatprep.subr.bf16.mxu1 %v1327_v4 }
 0x645   :  { %v443_v0 = vpop.f32.mrb[4].mxu1 }
 0x646   :  { %v454_v1 = vadd.f32 %v443_v0, %v1395_v17  ;;  %v1174_v2 = vpop.f32.mrb[5].mxu1  ;;  %v447_v5 = vadd.f32 %v443_v0, %v134_v3 }
 0x648   :  { %456 = vrot.lane.b32.xlu1 %v454_v1, %s1331_s26  ;;  %v1089_v6 = vmul.f32 -1.442695, %v447_v5 }
 0x64a   :  { %1267 = vpow2.f32 %v1089_v6 }
 0x654   :  { %v1268_v8 = vpop.eup %1267 }
 0x655   :  { %v451_v10 = vadd.f32 1.0, %v1268_v8 }
 0x657   :  { %1269 = vrcp.f32 %v451_v10 }
 0x661   :  { %v1270_v11 = vpop.eup %1269 }
 0x662   :  { %v466_v19 = vsub.f32 1.0, %v1270_v11  ;;  %v472_v21 = vmul.f32 %v1270_v11, %v371_v60 }
 0x6ba   :  { %v457_v12 = vpop.permute.xlu1 %456 }
 0x6bb   :  { %v459_v13 = vmul.f32 %v1270_v11, %v457_v12 }
 0x6bd   :  { %461 = vrot.lane.b32.xlu0 %v459_v13, %s1330_s1 }
 0x72f   :  { %v462_v14 = vpop.permute.xlu0 %461 }
 0x730   :  { %v464_v15 = vadd.f32 %v462_v14, %v134_v3  ;;  %v149_v14 = vadd.f32 %v1150_v48, %v1384_v16 }
 0x732   :  { %1271 = vtanh.f32 %v464_v15 }
 0x73c   :  { %v1272_v18 = vpop.eup %1271 }
 0x73d   :  { %468 = vrot.lane.b32.xlu1 %v1272_v18, %s1332_s27 }
 0x7af   :  { %v469_v20 = vpop.permute.xlu1 %468 }
 0x7b0   :  { %v471_v22 = vmul.f32 %v469_v20, %v466_v19 }
 0x7b2   :  { %v473_v23 = vadd.f32 %v472_v21, %v471_v22 }
 0x7b4   :  { %475 = vrot.lane.b32.xlu0 %v473_v23, %s1332_s27 }
 0x826   :  { %v476_v24 = vpop.permute.xlu0 %475 }
 0x827   :  { %1180 = vmatmul.mubr.msk.f32.vlgmr.msra.gmra.mrb[6].mxu1 %vm32_vm1, %v476_v24 }
 0x828   :  { %1238 = vmatpush3.bf16.msra.mxu1 %v1372_v9  ;;  %1193 = vmatprep.mubr.msk.f32.mxu1 %vm1328_vm0, %v1329_v7 }
 0x829   :  { %1242 = vmatprep.subr.bf16.mxu1 %v1327_v4 }
 0x8fa   :  { %v545_v25 = vpop.f32.mrb[6].mxu1 }
 0x8fb   :  { %v556_v26 = vadd.f32 %v545_v25, %v1395_v17  ;;  %v1181_v27 = vpop.f32.mrb[7].mxu1  ;;  %v549_v29 = vadd.f32 %v545_v25, %v139_v28 }
 0x8fd   :  { %558 = vrot.lane.b32.xlu1 %v556_v26, %s1331_s26  ;;  %v1091_v30 = vmul.f32 -1.442695, %v549_v29 }
 0x8ff   :  { %1273 = vpow2.f32 %v1091_v30 }
 0x909   :  { %v1274_v31 = vpop.eup %1273 }
 0x90a   :  { %v553_v32 = vadd.f32 1.0, %v1274_v31 }
 0x90c   :  { %1275 = vrcp.f32 %v553_v32 }
 0x916   :  { %v1276_v33 = vpop.eup %1275 }
 0x917   :  { %v568_v43 = vsub.f32 1.0, %v1276_v33  ;;  %v574_v45 = vmul.f32 %v1276_v33, %v473_v23 }
 0x96f   :  { %v559_v34 = vpop.permute.xlu1 %558 }
 0x970   :  { %v561_v35 = vmul.f32 %v1276_v33, %v559_v34 }
 0x972   :  { %563 = vrot.lane.b32.xlu0 %v561_v35, %s1330_s1  ;;  %v154_v35 = vadd.f32 %v1464_v51, %v1384_v16 }
 0x9e4   :  { %v564_v36 = vpop.permute.xlu0 %563 }
 0x9e5   :  { %v566_v37 = vadd.f32 %v564_v36, %v139_v28 }
 0x9e7   :  { %1277 = vtanh.f32 %v566_v37 }
 0x9f1   :  { %v1278_v42 = vpop.eup %1277 }
 0x9f2   :  { %570 = vrot.lane.b32.xlu1 %v1278_v42, %s1332_s27 }
 0xa64   :  { %v571_v44 = vpop.permute.xlu1 %570 }
 0xa65   :  { %v573_v46 = vmul.f32 %v571_v44, %v568_v43 }
 0xa67   :  { %v575_v47 = vadd.f32 %v574_v45, %v573_v46 }
 0xa69   :  { %577 = vrot.lane.b32.xlu0 %v575_v47, %s1332_s27 }
 0xadb   :  { %v578_v52 = vpop.permute.xlu0 %577 }
 0xadc   :  { %1187 = vmatmul.mubr.msk.f32.vlgmr.msra.gmra.mrb[8].mxu0 %vm32_vm1, %v578_v52 }
 0xadd   :  { %1241 = vmatpush3.bf16.msra.mxu0 %v1372_v9  ;;  %1200 = vmatprep.mubr.msk.f32.mxu0 %vm1328_vm0, %v1329_v7 }
 0xade   :  { %1245 = vmatprep.subr.bf16.mxu0 %v1327_v4 }
 0xbaf   :  { %v647_v53 = vpop.f32.mrb[8].mxu0 }
 0xbb0   :  { %v658_v54 = vadd.f32 %v647_v53, %v1395_v17  ;;  %v1188_v55 = vpop.f32.mrb[9].mxu0  ;;  %v651_v57 = vadd.f32 %v647_v53, %v144_v56 }
 0xbb1   :  { %v159_v55 = vadd.f32 %v1462_v50, %v1384_v16  ;;  %v985_v16 = vld [vmem:[%s1526_s2 + $0x8] sm:$0xff] }
 0xbb2   :  { %660 = vrot.lane.b32.xlu1 %v658_v54, %s1331_s26  ;;  %v1093_v58 = vmul.f32 -1.442695, %v651_v57 }
 0xbb4   :  { %1279 = vpow2.f32 %v1093_v58 }
 0xbbe   :  { %v1280_v59 = vpop.eup %1279 }
 0xbbf   :  { %v655_v60 = vadd.f32 1.0, %v1280_v59 }
 0xbc1   :  { %1281 = vrcp.f32 %v655_v60 }
 0xbcb   :  { %v1282_v61 = vpop.eup %1281 }
 0xbcc   :  { %v670_v2 = vsub.f32 1.0, %v1282_v61  ;;  %v676_v5 = vmul.f32 %v1282_v61, %v575_v47 }
 0xc24   :  { %v661_v62 = vpop.permute.xlu1 %660 }
 0xc25   :  { %v663_v63 = vmul.f32 %v1282_v61, %v661_v62 }
 0xc27   :  { %665 = vrot.lane.b32.xlu0 %v663_v63, %s1330_s1 }
 0xc99   :  { %v666_v4 = vpop.permute.xlu0 %665 }
 0xc9a   :  { %v668_v0 = vadd.f32 %v666_v4, %v144_v56 }
 0xc9c   :  { %1283 = vtanh.f32 %v668_v0 }
 0xca6   :  { %v1284_v1 = vpop.eup %1283 }
 0xca7   :  { %672 = vrot.lane.b32.xlu1 %v1284_v1, %s1332_s27 }
 0xd19   :  { %v673_v3 = vpop.permute.xlu1 %672 }
 0xd1a   :  { %v675_v6 = vmul.f32 %v673_v3, %v670_v2 }
 0xd1c   :  { %v677_v8 = vadd.f32 %v676_v5, %v675_v6 }
 0xd1e   :  { %679 = vrot.lane.b32.xlu0 %v677_v8, %s1332_s27 }
 0xd90   :  { %v680_v10 = vpop.permute.xlu0 %679 }
 0xd91   :  { %1194 = vmatmul.mubr.msk.f32.vlgmr.msra.gmra.mrb[8].mxu1 %vm32_vm1, %v680_v10 }
 0xd92   :  { %1244 = vmatpush3.bf16.msra.mxu1 %v1372_v9  ;;  %1207 = vmatprep.mubr.msk.f32.mxu1 %vm1328_vm0, %v1329_v7 }
 0xe64   :  { %v749_v11 = vpop.f32.mrb[8].mxu1 }
 0xe65   :  { %v760_v12 = vadd.f32 %v749_v11, %v1395_v17  ;;  %v1195_v13 = vpop.f32.mrb[9].mxu1  ;;  %v753_v15 = vadd.f32 %v749_v11, %v149_v14 }
 0xe67   :  { %762 = vrot.lane.b32.xlu1 %v760_v12, %s1331_s26  ;;  %v1095_v18 = vmul.f32 -1.442695, %v753_v15 }
 0xe69   :  { %1285 = vpow2.f32 %v1095_v18 }
 0xe73   :  { %v1286_v19 = vpop.eup %1285 }
 0xe74   :  { %v757_v20 = vadd.f32 1.0, %v1286_v19 }
 0xe76   :  { %1287 = vrcp.f32 %v757_v20 }
 0xe80   :  { %v1288_v21 = vpop.eup %1287 }
 0xe81   :  { %v772_v26 = vsub.f32 1.0, %v1288_v21  ;;  %v778_v28 = vmul.f32 %v1288_v21, %v677_v8 }
 0xed9   :  { %v763_v22 = vpop.permute.xlu1 %762 }
 0xeda   :  { %v765_v9 = vmul.f32 %v1288_v21, %v763_v22 }
 0xedc   :  { %767 = vrot.lane.b32.xlu0 %v765_v9, %s1330_s1 }
 0xf4e   :  { %v768_v23 = vpop.permute.xlu0 %767 }
 0xf4f   :  { %v770_v24 = vadd.f32 %v768_v23, %v149_v14 }
 0xf51   :  { %1289 = vtanh.f32 %v770_v24 }
 0xf5b   :  { %v1290_v25 = vpop.eup %1289 }
 0xf5c   :  { %774 = vrot.lane.b32.xlu1 %v1290_v25, %s1332_s27 }
 0xfce   :  { %v775_v27 = vpop.permute.xlu1 %774 }
 0xfcf   :  { %v777_v29 = vmul.f32 %v775_v27, %v772_v26 }
 0xfd1   :  { %v779_v30 = vadd.f32 %v778_v28, %v777_v29 }
 0xfd3   :  { %781 = vrot.lane.b32.xlu0 %v779_v30, %s1332_s27 }
0x1045   :  { %v782_v31 = vpop.permute.xlu0 %781 }
0x1046   :  { %1201 = vmatmul.mubr.msk.f32.vlgmr.msra.gmra.mrb[10].mxu0 %vm32_vm1, %v782_v31 }
0x1047   :  { %1214 = vmatprep.mubr.msk.f32.mxu0 %vm1328_vm0, %v1329_v7 }
0x1119   :  { %v851_v32 = vpop.f32.mrb[10].mxu0 }
0x111a   :  { %v862_v33 = vadd.f32 %v851_v32, %v1395_v17  ;;  %v1202_v34 = vpop.f32.mrb[11].mxu0  ;;  %v855_v36 = vadd.f32 %v851_v32, %v154_v35 }
0x111c   :  { %864 = vrot.lane.b32.xlu1 %v862_v33, %s1331_s26  ;;  %v1097_v37 = vmul.f32 -1.442695, %v855_v36 }
0x111e   :  { %1291 = vpow2.f32 %v1097_v37 }
0x1128   :  { %v1292_v38 = vpop.eup %1291 }
0x1129   :  { %v859_v39 = vadd.f32 1.0, %v1292_v38 }
0x112b   :  { %1293 = vrcp.f32 %v859_v39 }
0x1135   :  { %v1294_v40 = vpop.eup %1293 }
0x1136   :  { %v874_v45 = vsub.f32 1.0, %v1294_v40  ;;  %v880_v47 = vmul.f32 %v1294_v40, %v779_v30 }
0x118e   :  { %v865_v41 = vpop.permute.xlu1 %864 }
0x118f   :  { %v867_v42 = vmul.f32 %v1294_v40, %v865_v41 }
0x1191   :  { %869 = vrot.lane.b32.xlu0 %v867_v42, %s1330_s1 }
0x1203   :  { %v870_v7 = vpop.permute.xlu0 %869 }
0x1204   :  { %v872_v43 = vadd.f32 %v870_v7, %v154_v35 }
0x1206   :  { %1295 = vtanh.f32 %v872_v43 }
0x1210   :  { %v1296_v44 = vpop.eup %1295 }
0x1211   :  { %876 = vrot.lane.b32.xlu1 %v1296_v44, %s1332_s27 }
0x1283   :  { %v877_v46 = vpop.permute.xlu1 %876 }
0x1284   :  { %v879_v48 = vmul.f32 %v877_v46, %v874_v45 }
0x1286   :  { %v881_v49 = vadd.f32 %v880_v47, %v879_v48 }
0x1288   :  { %883 = vrot.lane.b32.xlu0 %v881_v49, %s1332_s27 }
0x12fa   :  { %v884_v51 = vpop.permute.xlu0 %883 }
0x12fb   :  { %1208 = vmatmul.mubr.msk.f32.vlgmr.msra.gmra.mrb[10].mxu1 %vm32_vm1, %v884_v51 }
0x13ce   :  { %v953_v52 = vpop.f32.mrb[10].mxu1 }
0x13cf   :  { %v964_v53 = vadd.f32 %v953_v52, %v1395_v17  ;;  %v1209_v54 = vpop.f32.mrb[11].mxu1  ;;  %v957_v56 = vadd.f32 %v953_v52, %v159_v55  ;;  %v984_v17 = vld [vmem:[%s1526_s2] sm:$0xff]  ;;  %s1303_s2 = scalar_lea.vmem %s1070_s17, 32 }
0x13d0   :  { %v1246_v50 = vpack.c.bf16 %v985_v16, %v984_v17  ;;  %p1304_p0 = scmp.ne.s32.totalorder %s1070_s17, %s1303_s2  ;;  %p1309_p2 = scmp.lt.s32.totalorder %s1303_s2, %s1303_s2 }
0x13d1   :  { %966 = vrot.lane.b32.xlu1 %v964_v53, %s1331_s26  ;;  %v1099_v57 = vmul.f32 -1.442695, %v957_v56 }
0x13d2   :  { %1247 = vmatpush3.bf16.msra.mxu0 %v1246_v50  ;;  %p1310_p3 = por %p1309_p2, %p1308_p1 }
0x13d3   :  { %1297 = vpow2.f32 %v1099_v57 }
0x13d4   :  { %p1311_p4 = pnand %p1310_p3, %p1304_p0 }
0x13dd   :  { %v1298_v58 = vpop.eup %1297 }
0x13de   :  { %v961_v59 = vadd.f32 1.0, %v1298_v58 }
0x13e0   :  { %1299 = vrcp.f32 %v961_v59 }
0x13ea   :  { %v1300_v60 = vpop.eup %1299 }
0x13eb   :  { %v976_v1 = vsub.f32 1.0, %v1300_v60  ;;  %v982_v3 = vmul.f32 %v1300_v60, %v881_v49 }
0x1443   :  { %v967_v61 = vpop.permute.xlu1 %966 }
0x1444   :  { %v969_v62 = vmul.f32 %v1300_v60, %v967_v61 }
0x1446   :  { %971 = vrot.lane.b32.xlu0 %v969_v62, %s1330_s1 }
0x14b8   :  { %v972_v63 = vpop.permute.xlu0 %971 }
0x14b9   :  { %v974_v4 = vadd.f32 %v972_v63, %v159_v55 }
0x14bb   :  { %1301 = vtanh.f32 %v974_v4 }
0x14c5   :  { %v1302_v0 = vpop.eup %1301 }
0x14c6   :  { %978 = vrot.lane.b32.xlu1 %v1302_v0, %s1332_s27 }
0x1538   :  { %v979_v2 = vpop.permute.xlu1 %978 }
0x1539   :  { %v981_v5 = vmul.f32 %v979_v2, %v976_v1 }
0x153b   :  { %v983_v6 = vadd.f32 %v982_v3, %v981_v5 }
0x153d   :  { %987 = vrot.lane.b32.xlu0 %v983_v6, %s1332_s27 }
0x15af   :  { %v988_v8 = vpop.permute.xlu0 %987 }
0x15b0   :  { %1215 = vmatmul.mubr.msk.f32.vlgmr.msra.gmra.mrb[12].mxu0 %vm32_vm1, %v988_v8 }
0x1683   :  { %v1057_v10 = vpop.f32.mrb[12].mxu0 }
0x1684   :  { %1062 = vst.msk [vmem:[#allocation2] sm:$0x3] %vm1061_vm2, %v1057_v10  ;;  %v1216_v11 = vpop.f32.mrb[13].mxu0 }
0x1685   :  { %1314 = shalt.err (!%p1311_p4)
}
0x1686   :  { %s1315_s20 = scalar_lea.hbm %s1527_s3, 32 }
0x1687   :  { %p1316_p5 = scmp.ne.s32.totalorder %s1527_s3, %s1315_s20  ;;  %p1319_p6 = scmp.lt.u32.totalorder %s1315_s20, %s1527_s3 }
0x1689   :  { %p1321_p7 = pnand %p1319_p6, %p1316_p5 }
0x168b   :  { %1324 = shalt.err (!%p1321_p7)
}
0x168c   :  { %1072 = dma.vmem_to_hbm [thread:$0]  %s1070_s17, 32, %s1527_s3, [#allocation3]  }
0x168d   :  { %1325 = dma.done.wait [#allocation3], 32  }
0x168e   :  { %1326 = vsyncadd [#allocation3], 4294967264 }
0x168f   :  { %1076 = vsyncpa [#allocation3], 1 }

</bundles_post_ra>
